<compile_context>
chip_gen: v7x
topology: tpu7x:2x2x1
jax: 0.10.0
libtpu: 0.0.40
codegen_flags: <defaults>
</compile_context>

<pallas_src>
import jax
import jax.numpy as jnp
from jax.experimental import pallas as pl
from jax.experimental.pallas import tpu as pltpu


def _sds_partial_kernel(sk_ref,    # VMEM (Bt, R, 128) sketch tile
                        nz_ref,    # VMEM (Bt, R, 128) noise  tile
                        a_ref,     # VMEM (1,  R, 128) folded coeff on sketch
                        b_ref,     # VMEM (1,  R, 128) folded coeff on noise
                        c_ref,     # VMEM (1,  R, 128) folded constant coeff
                        out_ref):  # VMEM (R, 128) per-step partial sum of grad^2
    # grad = A*sketch + Bn*noise + Cc  (all normalization/noising/CFG/weighting folded)
    grad = a_ref[...] * sk_ref[...] + b_ref[...] * nz_ref[...] + c_ref[...]
    # Reduce only over the leading (batch-tile) axis: pure VPU adds, no XLU,
    # lane-dense (R, 128) unmasked store.
    out_ref[...] = jnp.sum(grad * grad, axis=0)


def _pick_batch_tile(B, R, budget_bytes=16 << 20):
    """Largest divisor of B whose double-buffered streamed footprint fits budget."""
    per_image = R * 128 * 4                       # bytes, one f32 image slab
    footprint = lambda bt: 2 * 2 * bt * per_image  # 2 streams x 2 buffers
    bt = B
    while bt > 1 and footprint(bt) > budget_bytes:
        bt -= 1
        while B % bt:
            bt -= 1
    return bt


def diffusion_loss_forward(sketches, noise,
                           ch_scale_u, ch_shift_u, ch_scale_c, ch_shift_c,
                           sqrt_ac, sqrt_1mac, w_t, guidance):
    """sketches, noise: (B, C, H, W) float32 (NCHW, PyTorch convention)."""
    B, C, H, W = sketches.shape
    F = C * H * W
    assert F % 128 == 0 and (F // 128) % 8 == 0, "flattened image must tile to (8k,128)"
    R = F // 128

    # --- glue (plain JAX): lane-dense layout --------------------------------
    sk = sketches.reshape(B, R, 128).astype(jnp.float32)
    nz = noise.reshape(B, R, 128).astype(jnp.float32)

    # --- fold normalization + noising + CFG + SDS weighting into 3 coeffs ---
    #   grad = A*sketch + Bn*noise + Cc   (per channel)
    w_eff = ch_scale_u + guidance * (ch_scale_c - ch_scale_u)
    b_eff = ch_shift_u + guidance * (ch_shift_c - ch_shift_u)
    A_ch = 2.0 * w_t * w_eff * sqrt_ac
    Bn_ch = w_t * (w_eff * sqrt_1mac - 1.0)
    Cc_ch = w_t * (b_eff - w_eff * sqrt_ac)

    def bcast_channel(p):   # (C,) per-channel -> (1, R, 128) flat image layout
        return jnp.broadcast_to(p[:, None, None], (C, H, W)).reshape(1, R, 128)

    A = bcast_channel(A_ch.astype(jnp.float32))
    Bn = bcast_channel(Bn_ch.astype(jnp.float32))
    Cc = bcast_channel(Cc_ch.astype(jnp.float32))

    # --- tiling --------------------------------------------------------------
    Bt = _pick_batch_tile(B, R)
    G = B // Bt

    per_image = R * 128 * 4
    vmem_needed = (2 * 2 * Bt * per_image      # sketch + noise, double-buffered
                   + 3 * 2 * per_image         # A, Bn, Cc (fetched once, 2 bufs)
                   + 2 * R * 128 * 4)          # output partial, double-buffered
    vmem_limit = int(min(64 << 20, max(2 * vmem_needed, 4 << 20)))

    img_spec = lambda: pl.BlockSpec((Bt, R, 128), lambda g: (g, 0, 0))
    coef_spec = lambda: pl.BlockSpec((1, R, 128), lambda g: (0, 0, 0))  # constant -> DMA'd once

    partials = pl.pallas_call(
        _sds_partial_kernel,
        out_shape=jax.ShapeDtypeStruct((G * R, 128), jnp.float32),
        grid_spec=pltpu.PrefetchScalarGridSpec(
            num_scalar_prefetch=0,
            grid=(G,),
            in_specs=[
                img_spec(),    # sketches
                img_spec(),    # noise
                coef_spec(),   # A
                coef_spec(),   # Bn
                coef_spec(),   # Cc
            ],
            out_specs=pl.BlockSpec((R, 128), lambda g: (g, 0)),
        ),
        compiler_params=pltpu.CompilerParams(
            dimension_semantics=("parallel",),   # independent per-step partials
            vmem_limit_bytes=vmem_limit,
        ),
    )(sk, nz, A, Bn, Cc)

    # single scalar reduce outside the hot loop:  0.5 * sum(grad^2) / B
    return 0.5 * jnp.sum(partials) / B


def _reference(sketches, noise, ch_scale_u, ch_shift_u, ch_scale_c, ch_shift_c,
               sqrt_ac, sqrt_1mac, w_t, guidance):
    B = sketches.shape[0]
    latents = sketches * 2.0 - 1.0
    latents_noisy = sqrt_ac * latents + sqrt_1mac * noise
    su = ch_scale_u[None, :, None, None]; bu = ch_shift_u[None, :, None, None]
    sc = ch_scale_c[None, :, None, None]; bc = ch_shift_c[None, :, None, None]
    pu = latents_noisy * su + bu
    pc = latents_noisy * sc + bc
    noise_pred = pu + guidance * (pc - pu)
    grad = w_t * (noise_pred - noise)
    return 0.5 * jnp.sum(grad * grad) / B


if __name__ == "__main__":
    key = jax.random.PRNGKey(0)
    k_sk, k_nz, k_wu, k_bu, k_wc, k_bc = jax.random.split(key, 6)

    B, C, H, W = 2, 4, 16, 16   # small latent-sized sketches (NCHW)
    sketches = jax.random.uniform(k_sk, (B, C, H, W), jnp.float32)        # in [0,1]
    noise = jax.random.normal(k_nz, (B, C, H, W), jnp.float32)

    # deterministic synthetic "UNet" parameters (per-channel affine, uncond & cond)
    ch_scale_u = 0.1 * jax.random.normal(k_wu, (C,), jnp.float32) + 1.0
    ch_shift_u = 0.1 * jax.random.normal(k_bu, (C,), jnp.float32)
    ch_scale_c = 0.1 * jax.random.normal(k_wc, (C,), jnp.float32) + 1.0
    ch_shift_c = 0.1 * jax.random.normal(k_bc, (C,), jnp.float32)

    # DDPM scaled-linear schedule (as in StableDiffusion), deterministic timestep
    betas = jnp.linspace(0.00085 ** 0.5, 0.012 ** 0.5, 1000, dtype=jnp.float32) ** 2
    alphas_cumprod = jnp.cumprod(1.0 - betas)
    t = 500
    a_t = alphas_cumprod[t]
    sqrt_ac = jnp.sqrt(a_t)
    sqrt_1mac = jnp.sqrt(1.0 - a_t)
    w_t = 1.0 - a_t            # standard SDS weighting
    guidance = 7.5             # classifier-free guidance scale

    loss = diffusion_loss_forward(
        sketches, noise, ch_scale_u, ch_shift_u, ch_scale_c, ch_shift_c,
        float(sqrt_ac), float(sqrt_1mac), float(w_t), guidance)
    loss = jax.block_until_ready(loss)

    ref = _reference(
        sketches, noise, ch_scale_u, ch_shift_u, ch_scale_c, ch_shift_c,
        float(sqrt_ac), float(sqrt_1mac), float(w_t), guidance)

    assert jnp.allclose(loss, ref, rtol=1e-4, atol=1e-4), (loss, ref)
    print("KERNEL_OK")
</pallas_src>

<mosaic_0001>
module attributes {stable_mosaic.version = 11 : i64} {
  func.func @_sds_partial_kernel(%arg0: i32, %arg1: memref<2x8x128xf32, #tpu.memory_space<vmem>>, %arg2: memref<2x8x128xf32, #tpu.memory_space<vmem>>, %arg3: memref<1x8x128xf32, #tpu.memory_space<vmem>>, %arg4: memref<1x8x128xf32, #tpu.memory_space<vmem>>, %arg5: memref<1x8x128xf32, #tpu.memory_space<vmem>>, %arg6: memref<8x128xf32, #tpu.memory_space<vmem>>) attributes {dimension_semantics = [#tpu.dimension_semantics<parallel>], iteration_bounds = array<i64: 1>, scalar_prefetch = 0 : i64, scratch_operands = 0 : i64, tpu.core_type = #tpu.core_type<tc>, window_params = [{transform_indices = @transform_0, window_bounds = array<i64: 2, 8, 128>}, {transform_indices = @transform_1, window_bounds = array<i64: 2, 8, 128>}, {pipeline_mode = #tpu.pipeline_mode<synchronous>, transform_indices = @transform_2, window_bounds = array<i64: 1, 8, 128>}, {pipeline_mode = #tpu.pipeline_mode<synchronous>, transform_indices = @transform_3, window_bounds = array<i64: 1, 8, 128>}, {pipeline_mode = #tpu.pipeline_mode<synchronous>, transform_indices = @transform_4, window_bounds = array<i64: 1, 8, 128>}, {transform_indices = @transform_5, window_bounds = array<i64: 8, 128>}]} {
    %c0 = arith.constant 0 : index
    %c0_0 = arith.constant 0 : index
    %c0_1 = arith.constant 0 : index
    %0 = vector.load %arg3[%c0, %c0_0, %c0_1] : memref<1x8x128xf32, #tpu.memory_space<vmem>>, vector<1x8x128xf32>
    %c0_2 = arith.constant 0 : index
    %c0_3 = arith.constant 0 : index
    %c0_4 = arith.constant 0 : index
    %1 = vector.load %arg1[%c0_2, %c0_3, %c0_4] : memref<2x8x128xf32, #tpu.memory_space<vmem>>, vector<2x8x128xf32>
    %2 = vector.broadcast %0 : vector<1x8x128xf32> to vector<2x8x128xf32>
    %3 = arith.mulf %2, %1 : vector<2x8x128xf32>
    %c0_5 = arith.constant 0 : index
    %c0_6 = arith.constant 0 : index
    %c0_7 = arith.constant 0 : index
    %4 = vector.load %arg4[%c0_5, %c0_6, %c0_7] : memref<1x8x128xf32, #tpu.memory_space<vmem>>, vector<1x8x128xf32>
    %c0_8 = arith.constant 0 : index
    %c0_9 = arith.constant 0 : index
    %c0_10 = arith.constant 0 : index
    %5 = vector.load %arg2[%c0_8, %c0_9, %c0_10] : memref<2x8x128xf32, #tpu.memory_space<vmem>>, vector<2x8x128xf32>
    %6 = vector.broadcast %4 : vector<1x8x128xf32> to vector<2x8x128xf32>
    %7 = arith.mulf %6, %5 : vector<2x8x128xf32>
    %8 = arith.addf %3, %7 : vector<2x8x128xf32>
    %c0_11 = arith.constant 0 : index
    %c0_12 = arith.constant 0 : index
    %c0_13 = arith.constant 0 : index
    %9 = vector.load %arg5[%c0_11, %c0_12, %c0_13] : memref<1x8x128xf32, #tpu.memory_space<vmem>>, vector<1x8x128xf32>
    %10 = vector.broadcast %9 : vector<1x8x128xf32> to vector<2x8x128xf32>
    %11 = arith.addf %8, %10 : vector<2x8x128xf32>
    %12 = arith.mulf %11, %11 : vector<2x8x128xf32>
    %cst = arith.constant dense<0.000000e+00> : vector<8x128xf32>
    %13 = vector.multi_reduction <add>, %12, %cst [0] : vector<2x8x128xf32> to vector<8x128xf32>
    %c0_14 = arith.constant 0 : index
    %c0_15 = arith.constant 0 : index
    %14 = vector.load %arg6[%c0_14, %c0_15] : memref<8x128xf32, #tpu.memory_space<vmem>>, vector<8x128xf32>
    tpu.vector_store %arg6[%c0_14, %c0_15], %13 {strides = array<i32>} : memref<8x128xf32, #tpu.memory_space<vmem>>, vector<8x128xf32>,
    return
  }
  func.func @transform_0(%arg0: i32) -> (i32, i32, i32) {
    %c0_i32 = arith.constant 0 : i32
    %c0_i32_0 = arith.constant 0 : i32
    %c0_i32_1 = arith.constant 0 : i32
    return %arg0, %c0_i32, %c0_i32_0 : i32, i32, i32
  }
  func.func @transform_1(%arg0: i32) -> (i32, i32, i32) {
    %c0_i32 = arith.constant 0 : i32
    %c0_i32_0 = arith.constant 0 : i32
    %c0_i32_1 = arith.constant 0 : i32
    return %arg0, %c0_i32, %c0_i32_0 : i32, i32, i32
  }
  func.func @transform_2(%arg0: i32) -> (i32, i32, i32) {
    %c0_i32 = arith.constant 0 : i32
    %c0_i32_0 = arith.constant 0 : i32
    %c0_i32_1 = arith.constant 0 : i32
    %c0_i32_2 = arith.constant 0 : i32
    return %c0_i32, %c0_i32_0, %c0_i32_1 : i32, i32, i32
  }
  func.func @transform_3(%arg0: i32) -> (i32, i32, i32) {
    %c0_i32 = arith.constant 0 : i32
    %c0_i32_0 = arith.constant 0 : i32
    %c0_i32_1 = arith.constant 0 : i32
    %c0_i32_2 = arith.constant 0 : i32
    return %c0_i32, %c0_i32_0, %c0_i32_1 : i32, i32, i32
  }
  func.func @transform_4(%arg0: i32) -> (i32, i32, i32) {
    %c0_i32 = arith.constant 0 : i32
    %c0_i32_0 = arith.constant 0 : i32
    %c0_i32_1 = arith.constant 0 : i32
    %c0_i32_2 = arith.constant 0 : i32
    return %c0_i32, %c0_i32_0, %c0_i32_1 : i32, i32, i32
  }
  func.func @transform_5(%arg0: i32) -> (i32, i32) {
    %c0_i32 = arith.constant 0 : i32
    %c0_i32_0 = arith.constant 0 : i32
    return %arg0, %c0_i32 : i32, i32
  }
}

</mosaic_0001>

<bundles_post_ra>
// kernel: tpu_custom_call.1
= control target key start
LH: loop header
LB: loop body
LE: loop exit
PB: predicated region body
PF: predicated region fallthrough
CT: control target
= control target key end

     0   :  { %10 = vsyncpa [#allocation3], 0  ;;  %s340_s0 = inlined_call_operand.hbm [shape: f32[2,8,128], index: 0, kind: input, shape index: {}]   ;;  %s341_s1 = inlined_call_operand.hbm [shape: f32[2,8,128], index: 1, kind: input, shape index: {}]   ;;  %s342_s2 = inlined_call_operand.hbm [shape: f32[1,8,128], index: 2, kind: input, shape index: {}]   ;;  %s343_s3 = inlined_call_operand.vmem [shape: f32[1,8,128], index: 3, kind: input, shape index: {}]   ;;  %s344_s4 = inlined_call_operand.hbm [shape: f32[1,8,128], index: 4, kind: input, shape index: {}]   ;;  %s345_s5 = inlined_call_operand.hbm [shape: f32[8,128], index: 5, kind: output, shape index: {}]  }
   0x1   :  { %11 = vsyncpa [#allocation6], 0 }
   0x2   :  { %12 = vsyncpa [#allocation9], 0 }
   0x3   :  { %13 = vsyncpa [#allocation4], 0  ;;  %s233_s18 = smov [#allocation5]   ;;  %s234_s20 = smov [#allocation2]  }
   0x4   :  { %s31_s19 = sshll.u32 %s233_s18, 4  ;;  %s19_s21 = sshll.u32 %s234_s20, 4  ;;  %s32_s19 = int_to_ptr.vmem [resolvable:$true] %s31_s19  ;;  %s270_s21 = int_to_ptr.vmem [resolvable:$true] %s19_s21 }
   0x5   :  { %s115_s24 = scalar_lea.hbm %s341_s1, 256 }
   0x6   :  { %p116_p0 = scmp.ne.s32.totalorder %s341_s1, %s115_s24  ;;  %p119_p1 = scmp.lt.u32.totalorder %s115_s24, %s341_s1 }
   0x8   :  { %p121_p2 = pnand %p119_p1, %p116_p0 }
   0xa   :  { %124 = shalt.err (!%p121_p2)
}
   0xb   :  { %s125_s29 = scalar_lea.vmem %s32_s19, 256  ;;  %p130_p4 = scmp.lt.s32.totalorder %s32_s19, %s32_s19 }
   0xc   :  { %p126_p3 = scmp.ne.s32.totalorder %s32_s19, %s125_s29  ;;  %p131_p5 = scmp.lt.s32.totalorder %s125_s29, %s125_s29 }
   0xe   :  { %p132_p6 = por %p131_p5, %p130_p4 }
  0x10   :  { %p133_p7 = pnand %p132_p6, %p126_p3 }
  0x12   :  { %136 = shalt.err (!%p133_p7)
}
  0x13   :  { %s235_s30 = smov 128   ;;  %s236_s6 = smov 8  }
  0x14   :  { %37 = dma.hbm_to_vmem [thread:$0]  %s341_s1, 256, %s32_s19, [#allocation6], %s235_s30, %s235_s30, %s236_s6  }
  0x15   :  { %s137_s11 = scalar_lea.hbm %s340_s0, 256 }
  0x16   :  { %p138_p8 = scmp.ne.s32.totalorder %s340_s0, %s137_s11  ;;  %p141_p9 = scmp.lt.u32.totalorder %s137_s11, %s340_s0 }
  0x18   :  { %p143_p10 = pnand %p141_p9, %p138_p8 }
  0x1a   :  { %146 = shalt.err (!%p143_p10)
}
  0x1b   :  { %s147_s16 = scalar_lea.vmem %s270_s21, 256  ;;  %p152_p12 = scmp.lt.s32.totalorder %s270_s21, %s270_s21 }
  0x1c   :  { %p148_p11 = scmp.ne.s32.totalorder %s270_s21, %s147_s16  ;;  %p153_p13 = scmp.lt.s32.totalorder %s147_s16, %s147_s16 }
  0x1e   :  { %p154_p0 = por %p153_p13, %p152_p12 }
  0x20   :  { %p155_p1 = pnand %p154_p0, %p148_p11 }
  0x22   :  { %158 = shalt.err (!%p155_p1)
}
  0x23   :  { %25 = dma.hbm_to_vmem [thread:$0]  %s340_s0, 256, %s270_s21, [#allocation3], %s235_s30, %s235_s30, %s236_s6  }
  0x24   :  { %s237_s18 = smov [#allocation7]   ;;  %s238_s20 = smov [#allocation8]  }
  0x25   :  { %s44_s19 = sshll.u32 %s237_s18, 4  ;;  %s56_s22 = sshll.u32 %s238_s20, 4  ;;  %s45_s19 = int_to_ptr.vmem [resolvable:$true] %s44_s19  ;;  %s57_s22 = int_to_ptr.vmem [resolvable:$true] %s56_s22 }
  0x26   :  { %s159_s25 = scalar_lea.hbm %s342_s2, 128 }
  0x27   :  { %p160_p2 = scmp.ne.s32.totalorder %s342_s2, %s159_s25  ;;  %p163_p3 = scmp.lt.u32.totalorder %s159_s25, %s342_s2 }
  0x29   :  { %p165_p4 = pnand %p163_p3, %p160_p2 }
  0x2b   :  { %168 = shalt.err (!%p165_p4)
}
  0x2c   :  { %s169_s0 = scalar_lea.vmem %s45_s19, 128  ;;  %p174_p6 = scmp.lt.s32.totalorder %s45_s19, %s45_s19 }
  0x2d   :  { %p170_p5 = scmp.ne.s32.totalorder %s45_s19, %s169_s0  ;;  %p175_p7 = scmp.lt.s32.totalorder %s169_s0, %s169_s0 }
  0x2f   :  { %p176_p8 = por %p175_p7, %p174_p6 }
  0x31   :  { %p177_p9 = pnand %p176_p8, %p170_p5 }
  0x33   :  { %180 = shalt.err (!%p177_p9)
}
  0x34   :  { %47 = dma.hbm_to_vmem [thread:$0]  %s342_s2, 128, %s45_s19, [#allocation6]  }
  0x35   :  { %s181_s8 = scalar_lea.hbm %s344_s4, 128 }
  0x36   :  { %p182_p10 = scmp.ne.s32.totalorder %s344_s4, %s181_s8  ;;  %p185_p11 = scmp.lt.u32.totalorder %s181_s8, %s344_s4 }
  0x38   :  { %p187_p12 = pnand %p185_p11, %p182_p10 }
  0x3a   :  { %190 = shalt.err (!%p187_p12)
}
  0x3b   :  { %s191_s13 = scalar_lea.vmem %s57_s22, 128  ;;  %p196_p0 = scmp.lt.s32.totalorder %s57_s22, %s57_s22 }
  0x3c   :  { %p192_p13 = scmp.ne.s32.totalorder %s57_s22, %s191_s13  ;;  %p197_p1 = scmp.lt.s32.totalorder %s191_s13, %s191_s13 }
  0x3e   :  { %p198_p2 = por %p197_p1, %p196_p0 }
  0x40   :  { %p199_p3 = pnand %p198_p2, %p192_p13 }
  0x42   :  { %202 = shalt.err (!%p199_p3)
}
  0x43   :  { %59 = dma.hbm_to_vmem [thread:$0]  %s344_s4, 128, %s57_s22, [#allocation9]  }
  0x44   :  { %225 = dma.done.wait [#allocation3], 256  }
  0x45   :  { %226 = vsyncadd [#allocation3], 4294967040 }
  0x46   :  { %227 = dma.done.wait [#allocation6], 384  }
  0x47   :  { %228 = vsyncadd [#allocation6], 4294966912 }
  0x48   :  { %229 = dma.done.wait [#allocation9], 128  }
  0x49   :  { %230 = vsyncadd [#allocation9], 4294967168  ;;  %v72_v0 = vld [vmem:[#allocation7] sm:$0xff]  ;;  %v74_v2 = vld [vmem:[#allocation2 + $0x8] sm:$0xff]  ;;  %s239_s4 = smov [#allocation10]  }
  0x4a   :  { %v73_v1 = vld [vmem:[#allocation2] sm:$0xff]  ;;  %v76_v4 = vmul.f32 %v74_v2, %v72_v0  ;;  %v78_v6 = vld [vmem:[#allocation5] sm:$0xff]  ;;  %v79_v7 = vld [vmem:[#allocation5 + $0x8] sm:$0xff]  ;;  %s97_s1 = sshll.u32 %s239_s4, 4  ;;  %s98_s1 = int_to_ptr.vmem [resolvable:$true] %s97_s1 }
  0x4b   :  { %v75_v3 = vmul.f32 %v73_v1, %v72_v0  ;;  %v77_v5 = vld [vmem:[%s343_s3] sm:$0xff]  ;;  %v84_v10 = vld [vmem:[#allocation8] sm:$0xff]  ;;  %s203_s17 = scalar_lea.vmem %s98_s1, 128  ;;  %p208_p5 = scmp.lt.s32.totalorder %s98_s1, %s98_s1 }
  0x4c   :  { %v80_v8 = vmul.f32 %v78_v6, %v77_v5  ;;  %v81_v9 = vmul.f32 %v79_v7, %v77_v5  ;;  %p204_p4 = scmp.ne.s32.totalorder %s98_s1, %s203_s17  ;;  %p209_p6 = scmp.lt.s32.totalorder %s203_s17, %s203_s17 }
  0x4e   :  { %v82_v11 = vadd.f32 %v80_v8, %v75_v3  ;;  %v83_v12 = vadd.f32 %v81_v9, %v76_v4  ;;  %p210_p7 = por %p209_p6, %p208_p5 }
  0x50   :  { %v85_v13 = vadd.f32 %v84_v10, %v82_v11  ;;  %v86_v14 = vadd.f32 %v84_v10, %v83_v12  ;;  %p211_p8 = pnand %p210_p7, %p204_p4 }
  0x52   :  { %v87_v15 = vmul.f32 %v85_v13, %v85_v13  ;;  %v88_v16 = vmul.f32 %v86_v14, %v86_v14 }
  0x54   :  { %v89_v17 = vadd.f32 %v88_v16, %v87_v15 }
  0x56   :  { %90 = vst [vmem:[#allocation10] sm:$0xff] %v89_v17 }
  0x57   :  { %214 = shalt.err (!%p211_p8)
}
  0x58   :  { %s215_s19 = scalar_lea.hbm %s345_s5, 128 }
  0x59   :  { %p216_p9 = scmp.ne.s32.totalorder %s345_s5, %s215_s19  ;;  %p219_p10 = scmp.lt.u32.totalorder %s215_s19, %s345_s5 }
  0x5b   :  { %p221_p11 = pnand %p219_p10, %p216_p9 }
  0x5d   :  { %224 = shalt.err (!%p221_p11)
}
  0x5e   :  { %100 = dma.vmem_to_hbm [thread:$0]  %s98_s1, 128, %s345_s5, [#allocation4]  }
  0x5f   :  { %231 = dma.done.wait [#allocation4], 128  }
  0x60   :  { %232 = vsyncadd [#allocation4], 4294967168 }
  0x61   :  { %104 = vsyncpa [#allocation3], 1 }
  0x62   :  { %105 = vsyncpa [#allocation6], 1 }
  0x63   :  { %106 = vsyncpa [#allocation9], 1 }
  0x64   :  { %107 = vsyncpa [#allocation4], 1 }

</bundles_post_ra>
